<compile_context>
chip_gen: v7x
topology: tpu7x:2x2x1
jax: 0.10.0
libtpu: 0.0.40
codegen_flags: <defaults>
</compile_context>

<pallas_src>
import functools

import jax
import jax.numpy as jnp
from jax.experimental import pallas as pl
from jax.experimental.pallas import tpu as pltpu

FC_DIM = 64
DEFAULT_TILE_ROWS = 2048   # packed rows per grid step (== 4096 batch rows, 1 MiB f32 tile)


def _round_up(n, m):
    return ((n + m - 1) // m) * m


def _odefunc_mlp_kernel(x_ref, wp_ref, bp_ref, o_ref, *, precision):
    # x_ref : (TILE, 128)  two batch rows packed per 128-lane vreg row
    # wp_ref: (128, 128)   block-diag of -(W*scale[:,None]).T (pre-scaled/transposed/negated)
    # bp_ref: (1, 128)     [-b, -b]
    y = jnp.dot(x_ref[...], wp_ref[...], precision=precision,
                preferred_element_type=jnp.float32)
    # TODO(synk): on v7x, check the bundle dump for how jnp.sin lowers; if it becomes a
    # long VALU polynomial the kernel can flip VALU-bound at 3.2 TB/s -- switch to a bf16
    # sin or a cheaper approximation for the bounded pre-activation range in that case.
    o_ref[...] = jnp.sin(y + bp_ref[...]).astype(o_ref.dtype)


def prepare_odefunc_params(W, b):
    """One-time parameter prep (depends only on W/b). Hoist/cache across ODE evaluations."""
    W = W.astype(jnp.float32)
    b = b.astype(jnp.float32)
    D = W.shape[0]
    absrow = jnp.sum(jnp.abs(W), axis=1)                     # (D,)
    c = jnp.max(absrow)
    sp_c = jnp.logaddexp(c, 0.0)                             # softplus(c), numerically stable
    scale = jnp.minimum(jnp.float32(1.0), sp_c / absrow)     # (D,)
    Wt_neg = -(W.T * scale[None, :])                         # == -(W*scale[:,None]).T
    Dp = 2 * D                                               # 128 lanes: 2 batch rows / vreg row
    Wp = (jnp.zeros((Dp, Dp), jnp.float32)
          .at[:D, :D].set(Wt_neg)
          .at[D:, D:].set(Wt_neg))
    bp = jnp.concatenate([-b, -b]).reshape(1, Dp)
    return Wp, bp


def odefunc_mlp_forward_packed(x, Wp, bp, *, tile_rows=DEFAULT_TILE_ROWS,
                               stream_dtype=None, matmul_precision=None):
    """Streamed Pallas forward: sin(x2 @ Wp + bp) with x packed 2 rows / 128 lanes."""
    N, D = x.shape
    Dp = Wp.shape[0]
    assert Dp == 2 * D and Wp.shape == (Dp, Dp) and bp.shape == (1, Dp)

    out_dtype = stream_dtype if stream_dtype is not None else x.dtype

    # Pack two batch rows per lane row.  Pad by AT MOST ONE row (odd N only); ragged
    # final grid blocks are handled by Pallas (masked loads / dropped OOB stores), so
    # there is no full-array jnp.pad or out[:N] bandwidth pass for the common even-N case.
    n_even = N + (N % 2)
    x_pad = x if n_even == N else jnp.pad(x, ((0, 1), (0, 0)))
    n2 = n_even // 2
    x2 = x_pad.reshape(n2, Dp)
    if stream_dtype is not None:
        x2 = x2.astype(stream_dtype)

    # Minimum sublane granularity for the streamed dtype (8 for 4-byte, 16 for 2-byte).
    itemsize = jnp.dtype(x2.dtype).itemsize
    sub = 8 * max(1, 4 // itemsize)
    tile = min(_round_up(tile_rows, sub), _round_up(n2, sub))
    grid = (pl.cdiv(n2, tile),)
    # v7x note: for peak perf make the number of grid steps even and >= ~8 per TensorCore
    # when N allows; pipeline depth can be swept with pipeline_mode=pl.Buffered(3).

    out2 = pl.pallas_call(
        functools.partial(_odefunc_mlp_kernel, precision=matmul_precision),
        out_shape=jax.ShapeDtypeStruct((n2, Dp), out_dtype),
        grid=grid,
        in_specs=[
            pl.BlockSpec((tile, Dp), lambda i: (i, 0)),   # streamed, double-buffered batch tile
            pl.BlockSpec((Dp, Dp), lambda i: (0, 0)),     # VMEM-resident packed weight (64 KiB)
            pl.BlockSpec((1, Dp), lambda i: (0, 0)),      # VMEM-resident packed bias
        ],
        out_specs=pl.BlockSpec((tile, Dp), lambda i: (i, 0)),
        compiler_params=pltpu.CompilerParams(
            dimension_semantics=("parallel",),            # v7x: shard batch over both TCs
            vmem_limit_bytes=32 * 1024 * 1024,
        ),
    )(x2, Wp, bp)

    out = out2.reshape(n_even, D)
    return out if n_even == N else out[:N]


def make_odefunc_mlp(W, b, *, tile_rows=DEFAULT_TILE_ROWS, stream_dtype=None,
                     matmul_precision=None):
    """Return a jitted f(t, x) with the packed, weight-normalized params cached across
    calls (ODE solvers evaluate the same W/b dozens of times per solve)."""
    Wp, bp = prepare_odefunc_params(W, b)

    @jax.jit
    def f(t, x):
        del t  # unused, as in the PyTorch module
        return odefunc_mlp_forward_packed(x, Wp, bp, tile_rows=tile_rows,
                                          stream_dtype=stream_dtype,
                                          matmul_precision=matmul_precision)
    return f


def odefunc_mlp_forward(t, x, W, b, *, tile_rows=DEFAULT_TILE_ROWS, stream_dtype=None,
                        matmul_precision=None):
    """Convenience one-shot forward (prep not cached). Prefer make_odefunc_mlp for solves."""
    del t
    Wp, bp = prepare_odefunc_params(W, b)
    return odefunc_mlp_forward_packed(x, Wp, bp, tile_rows=tile_rows,
                                      stream_dtype=stream_dtype,
                                      matmul_precision=matmul_precision)


def reference_forward(t, x, W, b):
    """Pure-JAX reference mirroring the PyTorch code."""
    del t
    absrow = jnp.sum(jnp.abs(W), axis=1)
    c = jnp.max(absrow)
    sp_c = jnp.logaddexp(c, 0.0)
    scale = jnp.minimum(1.0, sp_c / absrow)
    Wn = W * scale[:, None]
    return jnp.sin(-(x @ Wn.T + b))


if __name__ == "__main__":
    key = jax.random.PRNGKey(0)
    k_x, k_w, k_b, k_x2, k_x3 = jax.random.split(key, 5)

    D = FC_DIM
    # Deterministic params, mimicking nn.Linear default init U(-1/sqrt(in), 1/sqrt(in)).
    bound = 1.0 / jnp.sqrt(jnp.float32(D))
    W = jax.random.uniform(k_w, (D, D), jnp.float32, -bound, bound)
    b = jax.random.uniform(k_b, (D,), jnp.float32, -bound, bound)
    t = jnp.float32(0.0)  # unused, kept for API parity

    # 1) Small case: even batch, single tile, single grid step.
    N = 32
    x = jax.random.normal(k_x, (N, D), jnp.float32)
    out = jax.block_until_ready(odefunc_mlp_forward(t, x, W, b))
    ref = reference_forward(t, x, W, b)
    assert out.shape == (N, D)
    assert jnp.allclose(out, ref, atol=2e-5, rtol=2e-5), "mismatch vs reference (small)"

    # 2) Odd batch -> one-row pad + ragged final grid block, multiple pipelined steps,
    #    params cached/jitted across calls via make_odefunc_mlp.
    func = make_odefunc_mlp(W, b, tile_rows=512)
    N_big = 2051
    x_big = jax.random.normal(k_x2, (N_big, D), jnp.float32)
    out_big = jax.block_until_ready(func(t, x_big))
    ref_big = reference_forward(t, x_big, W, b)
    assert out_big.shape == (N_big, D)
    assert jnp.allclose(out_big, ref_big, atol=2e-5, rtol=2e-5), "mismatch vs reference (ragged)"
    # Second call reuses the cached packed params / compiled kernel.
    out_big2 = jax.block_until_ready(func(t, x_big))
    assert jnp.allclose(out_big2, ref_big, atol=2e-5, rtol=2e-5), "mismatch vs reference (cached)"

    # 3) bf16 streaming path (halves x/out HBM traffic; relaxed tolerance).
    func_bf16 = make_odefunc_mlp(W, b, tile_rows=1024, stream_dtype=jnp.bfloat16)
    N_bf = 4096
    x_bf = jax.random.normal(k_x3, (N_bf, D), jnp.float32)
    out_bf = jax.block_until_ready(func_bf16(t, x_bf))
    ref_bf = reference_forward(t, x_bf, W, b)
    assert out_bf.shape == (N_bf, D)
    assert jnp.allclose(out_bf.astype(jnp.float32), ref_bf, atol=3e-2), "mismatch vs reference (bf16)"

    print("KERNEL_OK")
</pallas_src>

<mosaic_0001>
module attributes {stable_mosaic.version = 11 : i64} {
  func.func @_odefunc_mlp_kernel(%arg0: i32, %arg1: memref<16x128xf32, #tpu.memory_space<vmem>>, %arg2: memref<128x128xf32, #tpu.memory_space<vmem>>, %arg3: memref<1x128xf32, #tpu.memory_space<vmem>>, %arg4: memref<16x128xf32, #tpu.memory_space<vmem>>) attributes {dimension_semantics = [#tpu.dimension_semantics<parallel>], iteration_bounds = array<i64: 1>, scalar_prefetch = 0 : i64, scratch_operands = 0 : i64, tpu.core_type = #tpu.core_type<tc>, window_params = [{transform_indices = @transform_0, window_bounds = array<i64: 16, 128>}, {pipeline_mode = #tpu.pipeline_mode<synchronous>, transform_indices = @transform_1, window_bounds = array<i64: 128, 128>}, {pipeline_mode = #tpu.pipeline_mode<synchronous>, transform_indices = @transform_2, window_bounds = array<i64: 1, 128>}, {transform_indices = @transform_3, window_bounds = array<i64: 16, 128>}]} {
    %c0 = arith.constant 0 : index
    %c0_0 = arith.constant 0 : index
    %0 = vector.load %arg1[%c0, %c0_0] : memref<16x128xf32, #tpu.memory_space<vmem>>, vector<16x128xf32>
    %c0_1 = arith.constant 0 : index
    %c0_2 = arith.constant 0 : index
    %1 = vector.load %arg2[%c0_1, %c0_2] : memref<128x128xf32, #tpu.memory_space<vmem>>, vector<128x128xf32>
    %cst = arith.constant dense<0.000000e+00> : vector<16x128xf32>
    %2 = tpu.matmul %0, %1, %cst {dimension_numbers = #tpu.dot_dimension_numbers<[1], [0], [0], [1], [0, 0, 1, 1], [], []>} : vector<16x128xf32>, vector<128x128xf32>, vector<16x128xf32> -> vector<16x128xf32>
    %c0_3 = arith.constant 0 : index
    %c0_4 = arith.constant 0 : index
    %3 = vector.load %arg3[%c0_3, %c0_4] : memref<1x128xf32, #tpu.memory_space<vmem>>, vector<1x128xf32>
    %4 = vector.broadcast %3 : vector<1x128xf32> to vector<16x128xf32>
    %5 = arith.addf %2, %4 : vector<16x128xf32>
    %6 = math.sin %5 : vector<16x128xf32>
    %c0_5 = arith.constant 0 : index
    %c0_6 = arith.constant 0 : index
    %7 = vector.load %arg4[%c0_5, %c0_6] : memref<16x128xf32, #tpu.memory_space<vmem>>, vector<16x128xf32>
    tpu.vector_store %arg4[%c0_5, %c0_6], %6 {strides = array<i32>} : memref<16x128xf32, #tpu.memory_space<vmem>>, vector<16x128xf32>,
    return
  }
  func.func @transform_0(%arg0: i32) -> (i32, i32) {
    %c0_i32 = arith.constant 0 : i32
    %c0_i32_0 = arith.constant 0 : i32
    return %arg0, %c0_i32 : i32, i32
  }
  func.func @transform_1(%arg0: i32) -> (i32, i32) {
    %c0_i32 = arith.constant 0 : i32
    %c0_i32_0 = arith.constant 0 : i32
    %c0_i32_1 = arith.constant 0 : i32
    return %c0_i32, %c0_i32_0 : i32, i32
  }
  func.func @transform_2(%arg0: i32) -> (i32, i32) {
    %c0_i32 = arith.constant 0 : i32
    %c0_i32_0 = arith.constant 0 : i32
    %c0_i32_1 = arith.constant 0 : i32
    return %c0_i32, %c0_i32_0 : i32, i32
  }
  func.func @transform_3(%arg0: i32) -> (i32, i32) {
    %c0_i32 = arith.constant 0 : i32
    %c0_i32_0 = arith.constant 0 : i32
    return %arg0, %c0_i32 : i32, i32
  }
}

</mosaic_0001>

<bundles_post_ra>
// kernel: tpu_custom_call.1
= control target key start
LH: loop header
LB: loop body
LE: loop exit
PB: predicated region body
PF: predicated region fallthrough
CT: control target
= control target key end

     0   :  { %8 = vsyncpa [#allocation3], 0  ;;  %s705_s0 = inlined_call_operand.hbm [shape: f32[16,128], index: 0, kind: input, shape index: {}]   ;;  %s706_s1 = inlined_call_operand.hbm [shape: f32[128,128], index: 1, kind: input, shape index: {}]   ;;  %s707_s2 = inlined_call_operand.vmem [shape: f32[1,128], index: 2, kind: input, shape index: {}]   ;;  %s708_s3 = inlined_call_operand.hbm [shape: f32[16,128], index: 3, kind: output, shape index: {}]  }
   0x1   :  { %9 = vsyncpa [#allocation6], 0 }
   0x2   :  { %10 = vsyncpa [#allocation4], 0  ;;  %s564_s12 = smov [#allocation2]   ;;  %s492_s16 = scalar_lea.hbm %s705_s0, 256 }
   0x3   :  { %s16_s13 = sshll.u32 %s564_s12, 4  ;;  %p493_p0 = scmp.ne.s32.totalorder %s705_s0, %s492_s16  ;;  %s17_s13 = int_to_ptr.vmem [resolvable:$true] %s16_s13 }
   0x4   :  { %p496_p1 = scmp.lt.u32.totalorder %s492_s16, %s705_s0 }
   0x6   :  { %p498_p2 = pnand %p496_p1, %p493_p0 }
   0x8   :  { %501 = shalt.err (!%p498_p2)
}
   0x9   :  { %s502_s21 = scalar_lea.vmem %s17_s13, 256  ;;  %p507_p4 = scmp.lt.s32.totalorder %s17_s13, %s17_s13 }
   0xa   :  { %p503_p3 = scmp.ne.s32.totalorder %s17_s13, %s502_s21  ;;  %p508_p5 = scmp.lt.s32.totalorder %s502_s21, %s502_s21 }
   0xc   :  { %p509_p6 = por %p508_p5, %p507_p4 }
   0xe   :  { %p510_p7 = pnand %p509_p6, %p503_p3 }
  0x10   :  { %513 = shalt.err (!%p510_p7)
}
  0x11   :  { %s565_s22 = smov 128   ;;  %s566_s23 = smov 8  }
  0x12   :  { %22 = dma.hbm_to_vmem [thread:$0]  %s705_s0, 256, %s17_s13, [#allocation3], %s565_s22, %s565_s22, %s566_s23  }
  0x13   :  { %s567_s26 = smov [#allocation5]   ;;  %s514_s30 = scalar_lea.hbm %s706_s1, 2048 }
  0x14   :  { %s28_s27 = sshll.u32 %s567_s26, 4  ;;  %p515_p8 = scmp.ne.s32.totalorder %s706_s1, %s514_s30  ;;  %s29_s27 = int_to_ptr.vmem [resolvable:$true] %s28_s27 }
  0x15   :  { %p518_p9 = scmp.lt.u32.totalorder %s514_s30, %s706_s1 }
  0x17   :  { %p520_p10 = pnand %p518_p9, %p515_p8 }
  0x19   :  { %523 = shalt.err (!%p520_p10)
}
  0x1a   :  { %s524_s8 = scalar_lea.vmem %s29_s27, 2048  ;;  %p529_p12 = scmp.lt.s32.totalorder %s29_s27, %s29_s27 }
  0x1b   :  { %p525_p11 = scmp.ne.s32.totalorder %s29_s27, %s524_s8  ;;  %p530_p13 = scmp.lt.s32.totalorder %s524_s8, %s524_s8 }
  0x1d   :  { %p531_p0 = por %p530_p13, %p529_p12 }
  0x1f   :  { %p532_p1 = pnand %p531_p0, %p525_p11 }
  0x21   :  { %535 = shalt.err (!%p532_p1)
}
  0x22   :  { %34 = dma.hbm_to_vmem [thread:$0]  %s706_s1, 2048, %s29_s27, [#allocation6], %s565_s22, %s565_s22, %s566_s23  }
  0x23   :  { %558 = dma.done.wait [#allocation3], 256  }
  0x24   :  { %559 = vsyncadd [#allocation3], 4294967040 }
  0x25   :  { %560 = dma.done.wait [#allocation6], 2048  }
  0x26   :  { %561 = vsyncadd [#allocation6], 4294965248  ;;  %v45_v0 = vld [vmem:[#allocation5] sm:$0xff]  ;;  %v46_v1 = vld [vmem:[#allocation5 + $0x8] sm:$0xff]  ;;  %v568_v51 = vmov 683565275  }
  0x27   :  { %v47_v2 = vld [vmem:[#allocation5 + $0x10] sm:$0xff]  ;;  %v433_v3 = vpack.c.bf16 %v46_v1, %v45_v0  ;;  %v48_v4 = vld [vmem:[#allocation5 + $0x18] sm:$0xff]  ;;  %v49_v6 = vld [vmem:[#allocation5 + $0x20] sm:$0xff]  ;;  %v569_v55 = vmov 2475754826  }
  0x28   :  { %v437_v5 = vpack.c.bf16 %v48_v4, %v47_v2  ;;  %v50_v7 = vld [vmem:[#allocation5 + $0x28] sm:$0xff]  ;;  %v43_v9 = vld [vmem:[#allocation2] sm:$0xff]  ;;  %v52_v11 = vld [vmem:[#allocation5 + $0x38] sm:$0xff]  ;;  %v570_v57 = vmov 2131351028  }
  0x29   :  { %434 = vmatprep.subr.bf16.mxu0 %v433_v3  ;;  %v441_v8 = vpack.c.bf16 %v50_v7, %v49_v6  ;;  %v51_v10 = vld [vmem:[#allocation5 + $0x30] sm:$0xff]  ;;  %430 = vmatprep.mubr.f32.mxu0 %v43_v9  ;;  %v53_v13 = vld [vmem:[#allocation5 + $0x40] sm:$0xff]  ;;  %v54_v14 = vld [vmem:[#allocation5 + $0x48] sm:$0xff]  ;;  %v571_v59 = vmov 2102212464  }
  0x2a   :  { %436 = vmatpush3.bf16.msra.mxu0 %v433_v3  ;;  %v445_v12 = vpack.c.bf16 %v52_v11, %v51_v10  ;;  %v449_v15 = vpack.c.bf16 %v54_v14, %v53_v13  ;;  %v55_v16 = vld [vmem:[#allocation5 + $0x50] sm:$0xff]  ;;  %v56_v17 = vld [vmem:[#allocation5 + $0x58] sm:$0xff]  ;;  %v57_v19 = vld [vmem:[#allocation5 + $0x60] sm:$0xff]  ;;  %v572_v61 = vmov 920167782  }
  0x2b   :  { %438 = vmatprep.subr.bf16.mxu0 %v437_v5  ;;  %v453_v18 = vpack.c.bf16 %v56_v17, %v55_v16  ;;  %v58_v20 = vld [vmem:[#allocation5 + $0x68] sm:$0xff]  ;;  %v59_v22 = vld [vmem:[#allocation5 + $0x70] sm:$0xff]  ;;  %v60_v23 = vld [vmem:[#allocation5 + $0x78] sm:$0xff]  ;;  %v573_v4 = vmov 1326507024  }
  0x2c   :  { %v457_v21 = vpack.c.bf16 %v58_v20, %v57_v19  ;;  %v461_v24 = vpack.c.bf16 %v60_v23, %v59_v22  ;;  %v44_v25 = vld [vmem:[#allocation2 + $0x8] sm:$0xff]  ;;  %v371_v26 = vld [vmem:[%s707_s2] ss:$0 sm:$0xff]  ;;  %s574_s2 = smov [#allocation7]  }
  0x2d   :  { %s358_s11 = sshll.u32 %s574_s2, 4  ;;  %s359_s11 = int_to_ptr.vmem [resolvable:$true] %s358_s11 }
  0x2e   :  { %440 = vmatpush3.bf16.msra.mxu0 %v437_v5  ;;  %s536_s12 = scalar_lea.vmem %s359_s11, 256  ;;  %p541_p3 = scmp.lt.s32.totalorder %s359_s11, %s359_s11 }
  0x2f   :  { %442 = vmatprep.subr.bf16.mxu0 %v441_v8  ;;  %p537_p2 = scmp.ne.s32.totalorder %s359_s11, %s536_s12  ;;  %p542_p4 = scmp.lt.s32.totalorder %s536_s12, %s536_s12 }
  0x31   :  { %p543_p5 = por %p542_p4, %p541_p3 }
  0x32   :  { %444 = vmatpush3.bf16.msra.mxu0 %v441_v8 }
  0x33   :  { %446 = vmatprep.subr.bf16.mxu0 %v445_v12  ;;  %p544_p6 = pnand %p543_p5, %p537_p2 }
  0x36   :  { %448 = vmatpush3.bf16.msra.mxu0 %v445_v12 }
  0x37   :  { %450 = vmatprep.subr.bf16.mxu0 %v449_v15 }
  0x3a   :  { %452 = vmatpush3.bf16.msra.mxu0 %v449_v15 }
  0x3b   :  { %454 = vmatprep.subr.bf16.mxu0 %v453_v18 }
  0x3e   :  { %456 = vmatpush3.bf16.msra.mxu0 %v453_v18 }
  0x3f   :  { %458 = vmatprep.subr.bf16.mxu0 %v457_v21 }
  0x42   :  { %460 = vmatpush3.bf16.msra.mxu0 %v457_v21 }
  0x43   :  { %462 = vmatprep.subr.bf16.mxu0 %v461_v24 }
  0x46   :  { %464 = vmatpush3.bf16.msra.mxu0 %v461_v24 }
  0x49   :  { %431 = vmatmul.mubr.f32.vlgmr.msra.gmra.mrb[0].mxu0 %v44_v25 }
 0x11c   :  { %v432_v27 = vpop.f32.mrb[0].mxu0 }
 0x11d   :  { %v628_v28 = vadd.f32 %v432_v27, %v371_v26  ;;  %v134_v29 = vpop.f32.mrb[1].mxu0 }
 0x11e   :  { %v630_v30 = vadd.f32 %v371_v26, %v134_v29 }
 0x11f   :  { %v247_v31 = vand.u32 2147483647, %v628_v28  ;;  %v250_v32 = vand.u32 2139095040, %v628_v28  ;;  %vm249_vm14 = vcmp.lt.s32.totalorder %v628_v28, 0 }
 0x120   :  { %v146_v33 = vand.u32 2139095040, %v630_v30  ;;  %v143_v36 = vand.u32 2147483647, %v630_v30 }
 0x121   :  { %v251_v34 = vshrl.u32 %v250_v32, 23  ;;  %v254_v35 = vand.u32 8388607, %v247_v31  ;;  %vm248_vm15 = vcmp.le.f32.partialorder %v247_v31, 0.7853982 }
 0x122   :  { %v147_v37 = vshrl.u32 %v146_v33, 23  ;;  %v640_v42 = vand.u32 8388607, %v143_v36 }
 0x123   :  { %v376_v38 = vadd.s32 4294967169, %v251_v34  ;;  %v255_v41 = vor.u32 8388608, %v254_v35 }
 0x124   :  { %v372_v39 = vadd.s32 4294967169, %v147_v37  ;;  %v151_v49 = vor.u32 8388608, %v640_v42 }
 0x125   :  { %v257_v40 = vadd.s32 1, %v376_v38  ;;  %v642_v48 = vshll.u32 %v255_v41, 8 }
 0x126   :  { %v153_v43 = vadd.s32 1, %v372_v39 }
 0x127   :  { %vm258_vm0 = vcmp.gt.s32.totalorder %v257_v40, 0 }
 0x128   :  { %v259_v44 = vsel %vm258_vm0, %v257_v40, 0  ;;  %vm154_vm1 = vcmp.gt.s32.totalorder %v153_v43, 0  ;;  %vm145_vm0 = vcmp.lt.s32.totalorder %v630_v30, 0 }
 0x129   :  { %v260_v45 = vshrl.u32 %v259_v44, 5  ;;  %v261_v46 = vand.u32 31, %v259_v44  ;;  %v155_v47 = vsel %vm154_vm1, %v153_v43, 0  ;;  %v191_v43 = vshll.u32 %v151_v49, 8 }
 0x12a   :  { %v645_v53 = vshrl.u32 %v155_v47, 5  ;;  %v157_v54 = vand.u32 31, %v155_v47  ;;  %vm144_vm1 = vcmp.le.f32.partialorder %v143_v36, 0.7853982 }
 0x12b   :  { %v262_v50 = vsub.s32 32, %v261_v46  ;;  %v264_v52 = vshll.u32 %v568_v51, %v261_v46  ;;  %v267_v56 = vshll.u32 %v569_v55, %v261_v46  ;;  %v270_v58 = vshll.u32 %v570_v57, %v261_v46 }
 0x12c   :  { %v273_v60 = vshll.u32 %v571_v59, %v261_v46  ;;  %v276_v62 = vshll.u32 %v572_v61, %v261_v46  ;;  %vm279_vm2 = vcmp.lt.s32.totalorder %v260_v45, 1  ;;  %vm280_vm3 = vcmp.lt.s32.totalorder %v260_v45, 2 }
 0x12d   :  { %v265_v63 = vshrl.u32 %v569_v55, %v262_v50  ;;  %v268_v0 = vshrl.u32 %v570_v57, %v262_v50  ;;  %v271_v1 = vshrl.u32 %v571_v59, %v262_v50  ;;  %v263_v2 = vshrl.u32 %v568_v51, %v262_v50 }
 0x12e   :  { %v274_v3 = vshrl.u32 %v572_v61, %v262_v50  ;;  %v277_v5 = vshrl.u32 %v573_v4, %v262_v50  ;;  %v158_v9 = vsub.s32 32, %v157_v54  ;;  %vm281_vm4 = vcmp.lt.s32.totalorder %v260_v45, 3 }
 0x12f   :  { %v266_v6 = vor.u32 %v265_v63, %v264_v52  ;;  %v269_v7 = vor.u32 %v268_v0, %v267_v56  ;;  %v272_v8 = vor.u32 %v271_v1, %v270_v58  ;;  %vm282_vm5 = vcmp.lt.s32.totalorder %v260_v45, 4 }
 0x130   :  { %v275_v10 = vor.u32 %v274_v3, %v273_v60  ;;  %v278_v11 = vor.u32 %v277_v5, %v276_v62  ;;  %v160_v19 = vshll.u32 %v568_v51, %v157_v54  ;;  %v161_v22 = vshrl.u32 %v569_v55, %v158_v9 }
 0x131   :  { %v283_v12 = vsel %vm279_vm2, %v263_v2, %v266_v6  ;;  %v284_v13 = vsel %vm282_vm5, %v272_v8, 2102212464  ;;  %v287_v14 = vsel %vm279_vm2, %v266_v6, %v269_v7  ;;  %v291_v15 = vsel %vm279_vm2, %v269_v7, %v272_v8 }
 0x132   :  { %v285_v16 = vsel %vm281_vm4, %v269_v7, %v284_v13  ;;  %v288_v17 = vsel %vm282_vm5, %v275_v10, 920167782  ;;  %v292_v18 = vsel %vm282_vm5, %v278_v11, 1326507024  ;;  %v163_v23 = vshll.u32 %v569_v55, %v157_v54 }
 0x133   :  { %v289_v20 = vsel %vm281_vm4, %v272_v8, %v288_v17  ;;  %v293_v21 = vsel %vm281_vm4, %v275_v10, %v292_v18  ;;  %v286_v24 = vsel %vm280_vm3, %v283_v12, %v285_v16  ;;  %v164_v27 = vshrl.u32 %v570_v57, %v158_v9 }
 0x134   :  { %v290_v25 = vsel %vm280_vm3, %v287_v14, %v289_v20  ;;  %v294_v26 = vsel %vm280_vm3, %v291_v15, %v293_v21  ;;  %v162_v35 = vor.u32 %v161_v22, %v160_v19  ;;  %v166_v38 = vshll.u32 %v570_v57, %v157_v54 }
 0x135   :  { %v654_v29 = vmul.u32.u64.low %v642_v48, %v294_v26  ;;  %v655_v32 = vmul.u32.u64.high %v642_v48, %v294_v26, %v654_v29  ;;  %v658_v33 = vmul.u32.u64.low %v642_v48, %v290_v25  ;;  %v659_v34 = vmul.u32.u64.high %v642_v48, %v290_v25, %v658_v33 }
 0x136   :  { %v165_v37 = vor.u32 %v164_v27, %v163_v23  ;;  %v167_v39 = vshrl.u32 %v571_v59, %v158_v9  ;;  %v169_v40 = vshll.u32 %v571_v59, %v157_v54  ;;  %v170_v41 = vshrl.u32 %v572_v61, %v158_v9 }
 0x137   :  { %v173_v42 = vshrl.u32 %v573_v4, %v158_v9  ;;  %v302_v44 = vmul.u32 %v642_v48, %v286_v24  ;;  %v159_v45 = vshrl.u32 %v568_v51, %v158_v9  ;;  %v172_v47 = vshll.u32 %v572_v61, %v157_v54 }
 0x138   :  { %v168_v46 = vor.u32 %v167_v39, %v166_v38  ;;  %vm304_vm6 = vc.u32 %v655_v32, %v658_v33  ;;  %v305_v50 = vadd.s32 1, %v659_v34  ;;  %v171_v52 = vor.u32 %v170_v41, %v169_v40 }
 0x139   :  { %vm175_vm7 = vcmp.lt.s32.totalorder %v645_v53, 1  ;;  %v174_v55 = vor.u32 %v173_v42, %v172_v47  ;;  %vm177_vm8 = vcmp.lt.s32.totalorder %v645_v53, 3  ;;  %vm178_vm9 = vcmp.lt.s32.totalorder %v645_v53, 4 }
 0x13a   :  { %v183_v56 = vsel %vm175_vm7, %v162_v35, %v165_v37  ;;  %v306_v49 = vsel %vm304_vm6, %v305_v50, %v659_v34  ;;  %v180_v57 = vsel %vm178_vm9, %v168_v46, 2102212464  ;;  %v184_v48 = vsel %vm178_vm9, %v171_v52, 920167782 }
 0x13b   :  { %v187_v51 = vsel %vm175_vm7, %v165_v37, %v168_v46  ;;  %v307_v58 = vadd.s32 %v306_v49, %v302_v44  ;;  %vm176_vm10 = vcmp.lt.s32.totalorder %v645_v53, 2  ;;  %v185_v54 = vsel %vm177_vm8, %v168_v46, %v184_v48 }
 0x13c   :  { %v188_v59 = vsel %vm178_vm9, %v174_v55, 1326507024  ;;  %v179_v60 = vsel %vm175_vm7, %v159_v45, %v162_v35  ;;  %v181_v61 = vsel %vm177_vm8, %v165_v37, %v180_v57  ;;  %v186_v62 = vsel %vm176_vm10, %v183_v56, %v185_v54 }
 0x13d   :  { %v189_v63 = vsel %vm177_vm8, %v171_v52, %v188_v59  ;;  %v308_v0 = vadd.s32 536870912, %v307_v58  ;;  %v669_v2 = vmul.u32.u64.low %v191_v43, %v186_v62  ;;  %v670_v3 = vmul.u32.u64.high %v191_v43, %v186_v62, %v669_v2 }
 0x13e   :  { %v190_v1 = vsel %vm176_vm10, %v187_v51, %v189_v63  ;;  %v182_v7 = vsel %vm176_vm10, %v179_v60, %v181_v61  ;;  %v303_v23 = vadd.s32 %v658_v33, %v655_v32  ;;  %vm339_vm5 = vweird.f32 %v628_v28 }
 0x13f   :  { %v672_v4 = vmul.u32.u64.low %v191_v43, %v190_v1  ;;  %v673_v5 = vmul.u32.u64.high %v191_v43, %v190_v1, %v672_v4  ;;  %v309_v6 = vshrl.u32 %v308_v0, 30  ;;  %v201_v9 = vadd.s32 1, %v670_v3 }
 0x140   :  { %v198_v53 = vmul.u32 %v191_v43, %v182_v7  ;;  %vm235_vm9 = vweird.f32 %v630_v30 }
 0x141   :  { %v310_v8 = vshll.u32 %v309_v6, 30  ;;  %vm200_vm11 = vc.u32 %v673_v5, %v669_v2  ;;  %v199_v44 = vadd.s32 %v669_v2, %v673_v5  ;;  %v333_v33 = vsub.s32 4, %v309_v6 }
 0x142   :  { %v202_v11 = vsel %vm200_vm11, %v201_v9, %v670_v3 }
 0x143   :  { %v311_v10 = vsub.s32 %v307_v58, %v310_v8  ;;  %v203_v12 = vadd.s32 %v202_v11, %v198_v53  ;;  %v334_v48 = vsel %vm249_vm14, %v333_v33, %v309_v6 }
 0x144   :  { %v336_v60 = vsel %vm248_vm15, 0, %v334_v48 }
 0x145   :  { %v313_v13 = vsub.s32 0, %v311_v10  ;;  %v204_v14 = vadd.s32 536870912, %v203_v12  ;;  %v340_v63 = vadd.s32 3, %v336_v60 }
 0x147   :  { %v377_v15 = vmin.u32 %v313_v13, %v311_v10  ;;  %v205_v16 = vshrl.u32 %v204_v14, 30  ;;  %v341_v3 = vand.u32 3, %v340_v63 }
 0x149   :  { %v315_v17 = vclz %v377_v15  ;;  %v206_v18 = vshll.u32 %v205_v16, 30  ;;  %v229_v62 = vsub.s32 4, %v205_v16  ;;  %vm346_vm2 = vcmp.eq.s32.totalorder %v341_v3, 2 }
 0x14a   :  { %vm343_vm3 = vcmp.eq.s32.totalorder %v341_v3, 0  ;;  %vm342_vm4 = vcmp.lt.s32.totalorder %v341_v3, 2 }
 0x14b   :  { %v378_v19 = vadd.s32 4294967294, %v315_v17  ;;  %v207_v20 = vsub.s32 %v203_v12, %v206_v18  ;;  %v230_v1 = vsel %vm145_vm0, %v229_v62, %v205_v16 }
 0x14c   :  { %v232_v5 = vsel %vm144_vm1, 0, %v230_v1 }
 0x14d   :  { %vm379_vm12 = vcmp.lt.s32.totalorder %v378_v19, 0  ;;  %v209_v22 = vsub.s32 0, %v207_v20  ;;  %v236_v9 = vadd.s32 3, %v232_v5 }
 0x14e   :  { %v318_v21 = vsel %vm379_vm12, 0, %v378_v19 }
 0x14f   :  { %v319_v24 = vsub.s32 32, %v318_v21  ;;  %v323_v25 = vsub.s32 4294967266, %v318_v21  ;;  %v373_v26 = vmin.u32 %v209_v22, %v207_v20  ;;  %v320_v27 = vshll.u32 %v311_v10, %v318_v21 }
 0x150   :  { %v237_v12 = vand.u32 3, %v236_v9 }
 0x151   :  { %v321_v29 = vshrl.u32 %v303_v23, %v319_v24  ;;  %v324_v34 = vadd.s32 127, %v323_v25  ;;  %v211_v35 = vclz %v373_v26 }
 0x152   :  { %vm242_vm6 = vcmp.eq.s32.totalorder %v237_v12, 2  ;;  %vm239_vm7 = vcmp.eq.s32.totalorder %v237_v12, 0  ;;  %vm238_vm8 = vcmp.lt.s32.totalorder %v237_v12, 2 }
 0x153   :  { %v322_v37 = vor.u32 %v321_v29, %v320_v27  ;;  %v325_v38 = vshll.u32 %v324_v34, 23  ;;  %v374_v39 = vadd.s32 4294967294, %v211_v35 }
 0x155   :  { %v326_v40 = vor.u32 4788187, %v325_v38  ;;  %vm375_vm13 = vcmp.lt.s32.totalorder %v374_v39, 0  ;;  %v329_v42 = vcvt.s32.f32 %v322_v37 }
 0x156   :  { %v214_v43 = vsel %vm375_vm13, 0, %v374_v39 }
 0x157   :  { %v327_v41 = vand.u32 2147483647, %v326_v40  ;;  %v215_v45 = vsub.s32 32, %v214_v43  ;;  %v219_v46 = vsub.s32 4294967266, %v214_v43  ;;  %v216_v47 = vshll.u32 %v207_v20, %v214_v43 }
 0x159   :  { %v330_v32 = vmul.f32 %v329_v42, %v327_v41  ;;  %v217_v50 = vshrl.u32 %v199_v44, %v215_v45  ;;  %v220_v52 = vadd.s32 127, %v219_v46 }
 0x15b   :  { %v331_v55 = vxor.u32 2147483648, %v330_v32  ;;  %v218_v56 = vor.u32 %v217_v50, %v216_v47  ;;  %v221_v49 = vshll.u32 %v220_v52, 23 }
 0x15d   :  { %v332_v57 = vsel %vm249_vm14, %v331_v55, %v330_v32  ;;  %v222_v58 = vor.u32 4788187, %v221_v49  ;;  %v225_v59 = vcvt.s32.f32 %v218_v56 }
 0x15e   :  { %v335_v51 = vsel %vm248_vm15, %v628_v28, %v332_v57 }
 0x15f   :  { %484 = vcosq.f32 %v335_v51  ;;  %v223_v54 = vand.u32 2147483647, %v222_v58 }
 0x160   :  { %486 = vsinq.f32 %v335_v51 }
 0x161   :  { %v226_v61 = vmul.f32 %v225_v59, %v223_v54 }
 0x163   :  { %v227_v0 = vxor.u32 2147483648, %v226_v61 }
 0x165   :  { %v228_v31 = vsel %vm145_vm0, %v227_v0, %v226_v61 }
 0x166   :  { %v231_v2 = vsel %vm144_vm1, %v630_v30, %v228_v31 }
 0x167   :  { %488 = vcosq.f32 %v231_v2 }
 0x168   :  { %490 = vsinq.f32 %v231_v2 }
 0x169   :  { %v485_v4 = vpop.eup %484 }
 0x16a   :  { %v487_v6 = vpop.eup %486  ;;  %v347_v7 = vxor.u32 2147483648, %v485_v4 }
 0x16b   :  { %v344_v8 = vxor.u32 2147483648, %v487_v6 }
 0x16c   :  { %v348_v53 = vsel %vm346_vm2, %v347_v7, %v487_v6 }
 0x16d   :  { %v345_v10 = vsel %vm343_vm3, %v485_v4, %v344_v8 }
 0x16e   :  { %v349_v36 = vsel %vm342_vm4, %v345_v10, %v348_v53 }
 0x16f   :  { %v350_v11 = vsel %vm339_vm5, nan, %v349_v36 }
 0x170   :  { %352 = vst [vmem:[#allocation7 + $0x8] sm:$0xff] %v350_v11 }
 0x171   :  { %v489_v13 = vpop.eup %488 }
 0x172   :  { %v491_v14 = vpop.eup %490  ;;  %v243_v15 = vxor.u32 2147483648, %v489_v13 }
 0x173   :  { %v240_v16 = vxor.u32 2147483648, %v491_v14 }
 0x174   :  { %v244_v17 = vsel %vm242_vm6, %v243_v15, %v491_v14 }
 0x175   :  { %v241_v18 = vsel %vm239_vm7, %v489_v13, %v240_v16 }
 0x176   :  { %v245_v19 = vsel %vm238_vm8, %v241_v18, %v244_v17 }
 0x177   :  { %v246_v28 = vsel %vm235_vm9, nan, %v245_v19 }
 0x178   :  { %351 = vst [vmem:[#allocation7] sm:$0xff] %v246_v28 }
 0x179   :  { %547 = shalt.err (!%p544_p6)
}
 0x17a   :  { %s548_s15 = scalar_lea.hbm %s708_s3, 256 }
 0x17b   :  { %p549_p7 = scmp.ne.s32.totalorder %s708_s3, %s548_s15  ;;  %p552_p8 = scmp.lt.u32.totalorder %s548_s15, %s708_s3 }
 0x17d   :  { %p554_p9 = pnand %p552_p8, %p549_p7 }
 0x17f   :  { %557 = shalt.err (!%p554_p9)
}
 0x180   :  { %364 = dma.vmem_to_hbm [thread:$0]  %s359_s11, 256, %s708_s3, [#allocation4], %s565_s22, %s565_s22, %s566_s23  }
 0x181   :  { %562 = dma.done.wait [#allocation4], 256  }
 0x182   :  { %563 = vsyncadd [#allocation4], 4294967040 }
 0x183   :  { %368 = vsyncpa [#allocation3], 1 }
 0x184   :  { %369 = vsyncpa [#allocation6], 1 }
 0x185   :  { %370 = vsyncpa [#allocation4], 1 }

</bundles_post_ra>
